<compile_context>
chip_gen: v7x
topology: tpu7x:2x2x1
jax: 0.10.0
libtpu: 0.0.40
codegen_flags: <defaults>
</compile_context>

<pallas_src>
import functools

import jax
import jax.numpy as jnp
from jax.experimental import pallas as pl
from jax.experimental.pallas import tpu as pltpu

HIDDEN = 256


def _round_up(n, m):
    return ((n + m - 1) // m) * m


def ddpg_actor_kernel(x_ref, w1_ref, b1_ref, w2_ref, b2_ref, w3_ref, b3_ref, o_ref):
    # x tile: (TB, S) bf16; weights bf16 (resident in VMEM); biases f32.
    # All matmuls accumulate in f32 on the MXU; elementwise stays f32.
    h1 = jnp.dot(x_ref[...], w1_ref[...],
                 preferred_element_type=jnp.float32) + b1_ref[...]
    h1 = jnp.maximum(h1, 0.0)
    h2 = jnp.dot(h1.astype(jnp.bfloat16), w2_ref[...],
                 preferred_element_type=jnp.float32) + b2_ref[...]
    h2 = jnp.maximum(h2, 0.0)
    y = jnp.dot(h2.astype(jnp.bfloat16), w3_ref[...],
                preferred_element_type=jnp.float32) + b3_ref[...]
    o_ref[...] = jnp.tanh(y).astype(o_ref.dtype)


def prepare_params(params):
    """One-time prep: cast weights to bf16 (native MXU dtype), keep biases f32.

    Hoisted out of the per-call path so the forward dispatches exactly one op
    (the pallas_call) plus the batch pad/cast of x.
    """
    return {
        "w1": params["w1"].astype(jnp.bfloat16),
        "b1": params["b1"].astype(jnp.float32),
        "w2": params["w2"].astype(jnp.bfloat16),
        "b2": params["b2"].astype(jnp.float32),
        "w3": params["w3"].astype(jnp.bfloat16),
        "b3": params["b3"].astype(jnp.float32),
    }


@functools.partial(jax.jit, static_argnames=("batch_tile",))
def ddpg_actor_forward(x, prepared, *, batch_tile=1024):
    """x: (B, state_dim) float32. prepared: output of prepare_params."""
    w1, b1 = prepared["w1"], prepared["b1"]
    w2, b2 = prepared["w2"], prepared["b2"]
    w3, b3 = prepared["w3"], prepared["b3"]

    B, S = x.shape
    A = w3.shape[1]

    # Batch tile: as large as batch_tile allows, but split into >=2 grid steps
    # when the batch is big enough so both v7x TensorCores get work.
    TB = min(batch_tile, _round_up(pl.cdiv(B, 2), 8))
    TB = max(TB, 8)
    B_pad = _round_up(B, TB)
    num_tiles = B_pad // TB

    # Only the batch dim is padded (to a whole number of tiles); the feature dim
    # stays at its real width S so the x read stream is not inflated in HBM.
    x_bf16 = x.astype(jnp.bfloat16)
    if B_pad != B:
        x_p = jnp.zeros((B_pad, S), jnp.bfloat16).at[:B, :].set(x_bf16)
    else:
        x_p = x_bf16

    # Weights/biases: constant index_map -> fetched once, resident across grid steps.
    const = lambda shape: pl.BlockSpec(shape, lambda i: (0, 0))

    flops = 2 * B_pad * (S * HIDDEN + HIDDEN * HIDDEN + HIDDEN * A)
    bytes_accessed = (x_p.size * 2
                      + w1.size * 2 + w2.size * 2 + w3.size * 2
                      + b1.size * 4 + b2.size * 4 + b3.size * 4
                      + B_pad * A * 4)

    out_padded = pl.pallas_call(
        ddpg_actor_kernel,
        out_shape=jax.ShapeDtypeStruct((B_pad, A), jnp.float32),
        grid_spec=pltpu.PrefetchScalarGridSpec(
            num_scalar_prefetch=0,
            grid=(num_tiles,),
            in_specs=[
                pl.BlockSpec((TB, S), lambda i: (i, 0)),  # x tile: pipelined
                const((S, HIDDEN)),                       # w1 resident
                const((1, HIDDEN)),                       # b1 resident
                const((HIDDEN, HIDDEN)),                  # w2 resident
                const((1, HIDDEN)),                       # b2 resident
                const((HIDDEN, A)),                       # w3 resident
                const((1, A)),                            # b3 resident
            ],
            out_specs=pl.BlockSpec((TB, A), lambda i: (i, 0)),
        ),
        compiler_params=pltpu.CompilerParams(
            dimension_semantics=("parallel",),            # megacore sharding on v7x
        ),
        cost_estimate=pl.CostEstimate(
            flops=int(flops),
            transcendentals=int(B_pad * A),
            bytes_accessed=int(bytes_accessed),
        ),
    )(x_p, w1, b1, w2, b2, w3, b3)

    return out_padded[:B, :]


def init_params(key, state_dim, action_dim):
    """Deterministic init mimicking PyTorch nn.Linear default
    (U[-1/sqrt(fan_in), 1/sqrt(fan_in)]); weights stored (in, out)."""
    ks = jax.random.split(key, 6)

    def linear(kw, kb, fan_in, fan_out):
        bound = 1.0 / jnp.sqrt(fan_in)
        w = jax.random.uniform(kw, (fan_in, fan_out), jnp.float32, -bound, bound)
        b = jax.random.uniform(kb, (1, fan_out), jnp.float32, -bound, bound)
        return w, b

    w1, b1 = linear(ks[0], ks[1], state_dim, HIDDEN)
    w2, b2 = linear(ks[2], ks[3], HIDDEN, HIDDEN)
    w3, b3 = linear(ks[4], ks[5], HIDDEN, action_dim)
    return {"w1": w1, "b1": b1, "w2": w2, "b2": b2, "w3": w3, "b3": b3}


if __name__ == "__main__":
    key = jax.random.PRNGKey(0)
    k_params, k_x = jax.random.split(key)

    batch, state_dim, action_dim = 2, 8, 4
    params = init_params(k_params, state_dim, action_dim)
    prepared = prepare_params(params)
    x = jax.random.normal(k_x, (batch, state_dim), jnp.float32)

    out = ddpg_actor_forward(x, prepared)
    out = jax.block_until_ready(out)

    # Pure-JAX reference with the same bf16-weight/activation, f32-accumulate numerics.
    def bf16_dot(a, w):
        return jnp.dot(a.astype(jnp.bfloat16), w.astype(jnp.bfloat16),
                       preferred_element_type=jnp.float32)

    h1 = jnp.maximum(bf16_dot(x, params["w1"]) + params["b1"], 0.0)
    h2 = jnp.maximum(bf16_dot(h1, params["w2"]) + params["b2"], 0.0)
    ref = jnp.tanh(bf16_dot(h2, params["w3"]) + params["b3"])

    assert out.shape == (batch, action_dim)
    assert jnp.allclose(out, ref, atol=1e-2, rtol=1e-2), (
        f"max abs diff {jnp.max(jnp.abs(out - ref))}")

    print("KERNEL_OK")
</pallas_src>

<mosaic_0001>
module attributes {stable_mosaic.version = 11 : i64} {
  func.func @ddpg_actor_kernel(%arg0: i32, %arg1: memref<8x8xbf16, #tpu.memory_space<vmem>>, %arg2: memref<8x256xbf16, #tpu.memory_space<vmem>>, %arg3: memref<1x256xf32, #tpu.memory_space<vmem>>, %arg4: memref<256x256xbf16, #tpu.memory_space<vmem>>, %arg5: memref<1x256xf32, #tpu.memory_space<vmem>>, %arg6: memref<256x4xbf16, #tpu.memory_space<vmem>>, %arg7: memref<1x4xf32, #tpu.memory_space<vmem>>, %arg8: memref<8x4xf32, #tpu.memory_space<vmem>>) attributes {dimension_semantics = [#tpu.dimension_semantics<parallel>], iteration_bounds = array<i64: 1>, scalar_prefetch = 0 : i64, scratch_operands = 0 : i64, tpu.core_type = #tpu.core_type<tc>, window_params = [{transform_indices = @transform_0, window_bounds = array<i64: 8, 8>}, {pipeline_mode = #tpu.pipeline_mode<synchronous>, transform_indices = @transform_1, window_bounds = array<i64: 8, 256>}, {pipeline_mode = #tpu.pipeline_mode<synchronous>, transform_indices = @transform_2, window_bounds = array<i64: 1, 256>}, {pipeline_mode = #tpu.pipeline_mode<synchronous>, transform_indices = @transform_3, window_bounds = array<i64: 256, 256>}, {pipeline_mode = #tpu.pipeline_mode<synchronous>, transform_indices = @transform_4, window_bounds = array<i64: 1, 256>}, {pipeline_mode = #tpu.pipeline_mode<synchronous>, transform_indices = @transform_5, window_bounds = array<i64: 256, 4>}, {pipeline_mode = #tpu.pipeline_mode<synchronous>, transform_indices = @transform_6, window_bounds = array<i64: 1, 4>}, {transform_indices = @transform_7, window_bounds = array<i64: 8, 4>}]} {
    %c0 = arith.constant 0 : index
    %c0_0 = arith.constant 0 : index
    %0 = vector.load %arg1[%c0, %c0_0] : memref<8x8xbf16, #tpu.memory_space<vmem>>, vector<8x8xbf16>
    %c0_1 = arith.constant 0 : index
    %c0_2 = arith.constant 0 : index
    %1 = vector.load %arg2[%c0_1, %c0_2] : memref<8x256xbf16, #tpu.memory_space<vmem>>, vector<8x256xbf16>
    %cst = arith.constant dense<0.000000e+00> : vector<8x256xf32>
    %2 = tpu.matmul %0, %1, %cst {dimension_numbers = #tpu.dot_dimension_numbers<[1], [0], [0], [1], [0, 0, 1, 1], [], []>} : vector<8x8xbf16>, vector<8x256xbf16>, vector<8x256xf32> -> vector<8x256xf32>
    %c0_3 = arith.constant 0 : index
    %c0_4 = arith.constant 0 : index
    %3 = vector.load %arg3[%c0_3, %c0_4] : memref<1x256xf32, #tpu.memory_space<vmem>>, vector<1x256xf32>
    %4 = vector.broadcast %3 : vector<1x256xf32> to vector<8x256xf32>
    %5 = arith.addf %2, %4 : vector<8x256xf32>
    %cst_5 = arith.constant 0.000000e+00 : f32
    %6 = vector.broadcast %cst_5 : f32 to vector<8x256xf32>
    %7 = arith.maximumf %5, %6 : vector<8x256xf32>
    %8 = arith.truncf %7 : vector<8x256xf32> to vector<8x256xbf16>
    %c0_6 = arith.constant 0 : index
    %c0_7 = arith.constant 0 : index
    %9 = vector.load %arg4[%c0_6, %c0_7] : memref<256x256xbf16, #tpu.memory_space<vmem>>, vector<256x256xbf16>
    %cst_8 = arith.constant dense<0.000000e+00> : vector<8x256xf32>
    %10 = tpu.matmul %8, %9, %cst_8 {dimension_numbers = #tpu.dot_dimension_numbers<[1], [0], [0], [1], [0, 0, 1, 1], [], []>} : vector<8x256xbf16>, vector<256x256xbf16>, vector<8x256xf32> -> vector<8x256xf32>
    %c0_9 = arith.constant 0 : index
    %c0_10 = arith.constant 0 : index
    %11 = vector.load %arg5[%c0_9, %c0_10] : memref<1x256xf32, #tpu.memory_space<vmem>>, vector<1x256xf32>
    %12 = vector.broadcast %11 : vector<1x256xf32> to vector<8x256xf32>
    %13 = arith.addf %10, %12 : vector<8x256xf32>
    %cst_11 = arith.constant 0.000000e+00 : f32
    %14 = vector.broadcast %cst_11 : f32 to vector<8x256xf32>
    %15 = arith.maximumf %13, %14 : vector<8x256xf32>
    %16 = arith.truncf %15 : vector<8x256xf32> to vector<8x256xbf16>
    %c0_12 = arith.constant 0 : index
    %c0_13 = arith.constant 0 : index
    %17 = vector.load %arg6[%c0_12, %c0_13] : memref<256x4xbf16, #tpu.memory_space<vmem>>, vector<256x4xbf16>
    %cst_14 = arith.constant dense<0.000000e+00> : vector<8x4xf32>
    %18 = tpu.matmul %16, %17, %cst_14 {dimension_numbers = #tpu.dot_dimension_numbers<[1], [0], [0], [1], [0, 0, 1, 1], [], []>} : vector<8x256xbf16>, vector<256x4xbf16>, vector<8x4xf32> -> vector<8x4xf32>
    %c0_15 = arith.constant 0 : index
    %c0_16 = arith.constant 0 : index
    %19 = vector.load %arg7[%c0_15, %c0_16] : memref<1x4xf32, #tpu.memory_space<vmem>>, vector<1x4xf32>
    %20 = vector.broadcast %19 : vector<1x4xf32> to vector<8x4xf32>
    %21 = arith.addf %18, %20 : vector<8x4xf32>
    %22 = math.tanh %21 : vector<8x4xf32>
    %c0_17 = arith.constant 0 : index
    %c0_18 = arith.constant 0 : index
    %23 = vector.load %arg8[%c0_17, %c0_18] : memref<8x4xf32, #tpu.memory_space<vmem>>, vector<8x4xf32>
    tpu.vector_store %arg8[%c0_17, %c0_18], %22 {strides = array<i32>} : memref<8x4xf32, #tpu.memory_space<vmem>>, vector<8x4xf32>,
    return
  }
  func.func @transform_0(%arg0: i32) -> (i32, i32) {
    %c0_i32 = arith.constant 0 : i32
    %c0_i32_0 = arith.constant 0 : i32
    return %arg0, %c0_i32 : i32, i32
  }
  func.func @transform_1(%arg0: i32) -> (i32, i32) {
    %c0_i32 = arith.constant 0 : i32
    %c0_i32_0 = arith.constant 0 : i32
    %c0_i32_1 = arith.constant 0 : i32
    return %c0_i32, %c0_i32_0 : i32, i32
  }
  func.func @transform_2(%arg0: i32) -> (i32, i32) {
    %c0_i32 = arith.constant 0 : i32
    %c0_i32_0 = arith.constant 0 : i32
    %c0_i32_1 = arith.constant 0 : i32
    return %c0_i32, %c0_i32_0 : i32, i32
  }
  func.func @transform_3(%arg0: i32) -> (i32, i32) {
    %c0_i32 = arith.constant 0 : i32
    %c0_i32_0 = arith.constant 0 : i32
    %c0_i32_1 = arith.constant 0 : i32
    return %c0_i32, %c0_i32_0 : i32, i32
  }
  func.func @transform_4(%arg0: i32) -> (i32, i32) {
    %c0_i32 = arith.constant 0 : i32
    %c0_i32_0 = arith.constant 0 : i32
    %c0_i32_1 = arith.constant 0 : i32
    return %c0_i32, %c0_i32_0 : i32, i32
  }
  func.func @transform_5(%arg0: i32) -> (i32, i32) {
    %c0_i32 = arith.constant 0 : i32
    %c0_i32_0 = arith.constant 0 : i32
    %c0_i32_1 = arith.constant 0 : i32
    return %c0_i32, %c0_i32_0 : i32, i32
  }
  func.func @transform_6(%arg0: i32) -> (i32, i32) {
    %c0_i32 = arith.constant 0 : i32
    %c0_i32_0 = arith.constant 0 : i32
    %c0_i32_1 = arith.constant 0 : i32
    return %c0_i32, %c0_i32_0 : i32, i32
  }
  func.func @transform_7(%arg0: i32) -> (i32, i32) {
    %c0_i32 = arith.constant 0 : i32
    %c0_i32_0 = arith.constant 0 : i32
    return %arg0, %c0_i32 : i32, i32
  }
}

</mosaic_0001>

<bundles_post_ra>
// kernel: ddpg_actor_forward.1
= control target key start
LH: loop header
LB: loop body
LE: loop exit
PB: predicated region body
PF: predicated region fallthrough
CT: control target
= control target key end

     0   :  { %12 = vsyncpa [#allocation3], 0  ;;  %s719_s24 = smov [#allocation2]   ;;  %s841_s0 = inlined_call_operand.vmem [shape: bf16[8,8], index: 0, kind: input, shape index: {}]   ;;  %s842_s1 = inlined_call_operand.vmem [shape: bf16[8,256], index: 1, kind: input, shape index: {}]   ;;  %s843_s2 = inlined_call_operand.vmem [shape: f32[1,256], index: 2, kind: input, shape index: {}]   ;;  %s844_s3 = inlined_call_operand.hbm [shape: bf16[256,256], index: 3, kind: input, shape index: {}]   ;;  %s845_s4 = inlined_call_operand.vmem [shape: f32[1,256], index: 4, kind: input, shape index: {}]   ;;  %s846_s5 = inlined_call_operand.vmem [shape: bf16[256,4], index: 5, kind: input, shape index: {}]   ;;  %s847_s6 = inlined_call_operand.vmem [shape: f32[1,4], index: 6, kind: input, shape index: {}]   ;;  %s848_s7 = inlined_call_operand.vmem [shape: f32[8,4], index: 7, kind: output, shape index: {}]  }
   0x1   :  { %s24_s25 = sshll.u32 %s719_s24, 4  ;;  %s695_s28 = scalar_lea.hbm %s844_s3, 4096  ;;  %s25_s25 = int_to_ptr.vmem [resolvable:$true] %s24_s25 }
   0x2   :  { %p696_p0 = scmp.ne.s32.totalorder %s844_s3, %s695_s28  ;;  %p699_p1 = scmp.lt.u32.totalorder %s695_s28, %s844_s3 }
   0x4   :  { %p701_p2 = pnand %p699_p1, %p696_p0 }
   0x6   :  { %704 = shalt.err (!%p701_p2)
}
   0x7   :  { %s705_s10 = scalar_lea.vmem %s25_s25, 4096  ;;  %p710_p4 = scmp.lt.s32.totalorder %s25_s25, %s25_s25 }
   0x8   :  { %p706_p3 = scmp.ne.s32.totalorder %s25_s25, %s705_s10  ;;  %p711_p5 = scmp.lt.s32.totalorder %s705_s10, %s705_s10 }
   0xa   :  { %p712_p6 = por %p711_p5, %p710_p4 }
   0xc   :  { %p713_p7 = pnand %p712_p6, %p706_p3 }
   0xe   :  { %716 = shalt.err (!%p713_p7)
}
   0xf   :  { %s720_s11 = smov 128   ;;  %s721_s12 = smov 8  }
  0x10   :  { %30 = dma.hbm_to_vmem [thread:$0]  %s844_s3, 4096, %s25_s25, [#allocation3], %s720_s11, %s720_s11, %s721_s12  }
  0x11   :  { %717 = dma.done.wait [#allocation3], 4096  }
  0x12   :  { %718 = vsyncadd [#allocation3], 4294963200  ;;  %v722_v0 = vmov 0   ;;  %v42_v1 = vld [vmem:[%s842_s1] sm:$0xff]  ;;  %vm64_vm0 = vcmask 1043456   ;;  %vm60_vm1 = vcmask 64512   ;;  %v45_v50 = vlaneseq }
  0x13   :  { %103 = vmatprep.mubr.bf16.mxu0 %v722_v0  ;;  %v549_v2 = vcombine.high %v42_v1, %v42_v1  ;;  %v548_v3 = vcombine.low %v42_v1, %v42_v1  ;;  %v629_v4 = vld [vmem:[#allocation2 + $0x4] ss:$8 sps:$4 sm:$0xff]   ;;  %v631_v5 = vld [vmem:[#allocation2] ss:$8 sps:$4 sm:$0xff]   ;;  %v632_v6 = vld [vmem:[#allocation2 + $0x14] ss:$8 sps:$4 sm:$0xff]  }
  0x14   :  { %320 = vmatprep.subr.bf16.mxu1 %v629_v4  ;;  %v41_v8 = vld [vmem:[%s841_s0] sm:$0xf]  ;;  %v634_v9 = vld [vmem:[#allocation2 + $0x10] ss:$8 sps:$4 sm:$0xff]   ;;  %v635_v10 = vld [vmem:[#allocation2 + $0x24] ss:$8 sps:$4 sm:$0xff]  }
  0x15   :  { %550 = vmatprep.subr.msk.bf16.mxu0 %vm64_vm0, %v549_v2  ;;  %v66_v7 = vsel %vm64_vm0, %v548_v3, 0  ;;  %321 = vmatpush1.bf16.msra.mxu1 %v631_v5  ;;  %v637_v11 = vld [vmem:[#allocation2 + $0x20] ss:$8 sps:$4 sm:$0xff]   ;;  %v638_v12 = vld [vmem:[#allocation2 + $0x34] ss:$8 sps:$4 sm:$0xff]   ;;  %v46_v51 = vshrl.u32 %v45_v50, 7 }
  0x16   :  { %72 = vmatpush1.bf16.msra.mxu0 %v66_v7  ;;  %322 = vmatprep.subr.bf16.mxu1 %v632_v6  ;;  %v640_v13 = vld [vmem:[#allocation2 + $0x30] ss:$8 sps:$4 sm:$0xff]   ;;  %v641_v14 = vld [vmem:[#allocation2 + $0x44] ss:$8 sps:$4 sm:$0xff]   ;;  %v643_v15 = vld [vmem:[#allocation2 + $0x40] ss:$8 sps:$4 sm:$0xff]  }
  0x17   :  { %v644_v16 = vld [vmem:[#allocation2 + $0x54] ss:$8 sps:$4 sm:$0xff]   ;;  %v646_v17 = vld [vmem:[#allocation2 + $0x50] ss:$8 sps:$4 sm:$0xff]   ;;  %v647_v18 = vld [vmem:[#allocation2 + $0x64] ss:$8 sps:$4 sm:$0xff]  }
  0x18   :  { %v649_v19 = vld [vmem:[#allocation2 + $0x60] ss:$8 sps:$4 sm:$0xff]   ;;  %v650_v20 = vld [vmem:[#allocation2 + $0x74] ss:$8 sps:$4 sm:$0xff]   ;;  %v652_v21 = vld [vmem:[#allocation2 + $0x70] ss:$8 sps:$4 sm:$0xff]  }
  0x19   :  { %551 = vmatmul.mubr.msk.bf16.vlgmr.msra.gmra.mrb[0].mxu0 %vm60_vm1, %v41_v8  ;;  %323 = vmatpush1.bf16.msra.mxu1 %v634_v9  ;;  %v653_v22 = vld [vmem:[#allocation2 + $0x84] ss:$8 sps:$4 sm:$0xff]   ;;  %v655_v23 = vld [vmem:[#allocation2 + $0x80] ss:$8 sps:$4 sm:$0xff]   ;;  %v656_v24 = vld [vmem:[#allocation2 + $0x94] ss:$8 sps:$4 sm:$0xff]  }
  0x1a   :  { %324 = vmatprep.subr.bf16.mxu1 %v635_v10  ;;  %v658_v25 = vld [vmem:[#allocation2 + $0x90] ss:$8 sps:$4 sm:$0xff]   ;;  %v659_v26 = vld [vmem:[#allocation2 + $0xa4] ss:$8 sps:$4 sm:$0xff]   ;;  %v661_v27 = vld [vmem:[#allocation2 + $0xa0] ss:$8 sps:$4 sm:$0xff]  }
  0x1b   :  { %v662_v28 = vld [vmem:[#allocation2 + $0xb4] ss:$8 sps:$4 sm:$0xff]   ;;  %v664_v29 = vld [vmem:[#allocation2 + $0xb0] ss:$8 sps:$4 sm:$0xff]   ;;  %v665_v30 = vld [vmem:[#allocation2 + $0xc4] ss:$8 sps:$4 sm:$0xff]  }
  0x1c   :  { %v667_v31 = vld [vmem:[#allocation2 + $0xc0] ss:$8 sps:$4 sm:$0xff]   ;;  %v668_v32 = vld [vmem:[#allocation2 + $0xd4] ss:$8 sps:$4 sm:$0xff]   ;;  %v670_v33 = vld [vmem:[#allocation2 + $0xd0] ss:$8 sps:$4 sm:$0xff]  }
  0x1d   :  { %325 = vmatpush1.bf16.msra.mxu1 %v637_v11  ;;  %v671_v34 = vld [vmem:[#allocation2 + $0xe4] ss:$8 sps:$4 sm:$0xff]   ;;  %v673_v35 = vld [vmem:[#allocation2 + $0xe0] ss:$8 sps:$4 sm:$0xff]   ;;  %v674_v36 = vld [vmem:[#allocation2 + $0xf4] ss:$8 sps:$4 sm:$0xff]  }
  0x1e   :  { %326 = vmatprep.subr.bf16.mxu1 %v638_v12  ;;  %v676_v37 = vld [vmem:[#allocation2 + $0xf0] ss:$8 sps:$4 sm:$0xff]   ;;  %v677_v38 = vld [vmem:[%s846_s5 + $0x40] sm:$0xff]   ;;  %v679_v40 = vld [vmem:[%s846_s5 + $0x48] sm:$0xff]   ;;  %v47_v52 = vsub.s32 0, %v46_v51  ;;  %v51_v54 = vsub.s32 1, %v46_v51 }
  0x1f   :  { %v678_v39 = vld [vmem:[%s846_s5] sm:$0xff]   ;;  %601 = vmatprep.subr.bf16.mxu0 %v677_v38  ;;  %v680_v41 = vld [vmem:[%s846_s5 + $0x8] sm:$0xff]   ;;  %v681_v42 = vld [vmem:[%s846_s5 + $0x50] sm:$0xff]   ;;  %vm541_vm2 = vcmask 31744  }
  0x20   :  { %602 = vmatpush3.bf16.msra.mxu0 %v678_v39  ;;  %v682_v43 = vld [vmem:[%s846_s5 + $0x10] sm:$0xff]   ;;  %v683_v44 = vld [vmem:[%s846_s5 + $0x58] sm:$0xff]   ;;  %v685_v46 = vld [vmem:[%s846_s5 + $0x60] sm:$0xff]  }
  0x21   :  { %327 = vmatpush1.bf16.msra.mxu1 %v640_v13  ;;  %603 = vmatprep.subr.bf16.mxu0 %v679_v40  ;;  %v684_v45 = vld [vmem:[%s846_s5 + $0x18] sm:$0xff]   ;;  %v686_v47 = vld [vmem:[%s846_s5 + $0x20] sm:$0xff]   ;;  %v687_v48 = vld [vmem:[%s846_s5 + $0x68] sm:$0xff]  }
  0x22   :  { %328 = vmatprep.subr.bf16.mxu1 %v641_v14  ;;  %v688_v49 = vld [vmem:[%s846_s5 + $0x28] sm:$0xff]   ;;  %v43_v53 = vld [vmem:[%s843_s2] sm:$0x3]  ;;  %v689_v3 = vld [vmem:[%s846_s5 + $0x70] sm:$0xff]  }
  0x23   :  { %v48_v55 = vrot.slane %v43_v53, %v47_v52  ;;  %v52_v56 = vrot.slane %v43_v53, %v51_v54  ;;  %v690_v4 = vld [vmem:[%s846_s5 + $0x30] sm:$0xff]   ;;  %v691_v5 = vld [vmem:[%s846_s5 + $0x78] sm:$0xff]   ;;  %v148_v7 = vld [vmem:[%s845_s4] sm:$0x3] }
  0x24   :  { %604 = vmatpush3.bf16.msra.mxu0 %v680_v41  ;;  %v692_v6 = vld [vmem:[%s846_s5 + $0x38] sm:$0xff]   ;;  %v153_v8 = vrot.slane %v148_v7, %v47_v52  ;;  %v157_v9 = vrot.slane %v148_v7, %v51_v54 }
  0x25   :  { %329 = vmatpush1.bf16.msra.mxu1 %v643_v15  ;;  %605 = vmatprep.subr.bf16.mxu0 %v681_v42 }
  0x26   :  { %330 = vmatprep.subr.bf16.mxu1 %v644_v16 }
  0x28   :  { %606 = vmatpush3.bf16.msra.mxu0 %v682_v43 }
  0x29   :  { %331 = vmatpush1.bf16.msra.mxu1 %v646_v17  ;;  %607 = vmatprep.subr.bf16.mxu0 %v683_v44 }
  0x2a   :  { %332 = vmatprep.subr.bf16.mxu1 %v647_v18 }
  0x2c   :  { %608 = vmatpush3.bf16.msra.mxu0 %v684_v45 }
  0x2d   :  { %333 = vmatpush1.bf16.msra.mxu1 %v649_v19  ;;  %609 = vmatprep.subr.bf16.mxu0 %v685_v46 }
  0x2e   :  { %334 = vmatprep.subr.bf16.mxu1 %v650_v20 }
  0x30   :  { %610 = vmatpush3.bf16.msra.mxu0 %v686_v47 }
  0x31   :  { %335 = vmatpush1.bf16.msra.mxu1 %v652_v21  ;;  %611 = vmatprep.subr.bf16.mxu0 %v687_v48  ;;  %v584_v21 = vld [vmem:[%s847_s6] ss:$0 sm:$0xff] }
  0x32   :  { %336 = vmatprep.subr.bf16.mxu1 %v653_v22 }
  0x34   :  { %612 = vmatpush3.bf16.msra.mxu0 %v688_v49 }
  0x35   :  { %337 = vmatpush1.bf16.msra.mxu1 %v655_v23  ;;  %613 = vmatprep.subr.bf16.mxu0 %v689_v3 }
  0x36   :  { %338 = vmatprep.subr.bf16.mxu1 %v656_v24 }
  0x38   :  { %614 = vmatpush3.bf16.msra.mxu0 %v690_v4 }
  0x39   :  { %339 = vmatpush1.bf16.msra.mxu1 %v658_v25  ;;  %615 = vmatprep.subr.bf16.mxu0 %v691_v5 }
  0x3a   :  { %340 = vmatprep.subr.bf16.mxu1 %v659_v26 }
  0x3c   :  { %616 = vmatpush3.bf16.msra.mxu0 %v692_v6 }
  0x3d   :  { %341 = vmatpush1.bf16.msra.mxu1 %v661_v27 }
  0x3e   :  { %342 = vmatprep.subr.bf16.mxu1 %v662_v28 }
  0x41   :  { %343 = vmatpush1.bf16.msra.mxu1 %v664_v29 }
  0x42   :  { %344 = vmatprep.subr.bf16.mxu1 %v665_v30 }
  0x45   :  { %345 = vmatpush1.bf16.msra.mxu1 %v667_v31 }
  0x46   :  { %346 = vmatprep.subr.bf16.mxu1 %v668_v32 }
  0x49   :  { %347 = vmatpush1.bf16.msra.mxu1 %v670_v33 }
  0x4a   :  { %348 = vmatprep.subr.bf16.mxu1 %v671_v34 }
  0x4d   :  { %349 = vmatpush1.bf16.msra.mxu1 %v673_v35 }
  0x4e   :  { %350 = vmatprep.subr.bf16.mxu1 %v674_v36 }
  0x51   :  { %351 = vmatpush1.bf16.msra.mxu1 %v676_v37 }
  0xec   :  { %v105_v57 = vpop.f32.mrb[0].mxu0 }
  0xed   :  { %v106_v58 = vadd.f32 %v105_v57, %v48_v55  ;;  %v107_v59 = vpop.f32.mrb[1].mxu0 }
  0xee   :  { %v108_v60 = vadd.f32 %v107_v59, %v52_v56  ;;  %v109_v61 = vpop.f32.mrb[2].mxu0 }
  0xef   :  { %v112_v62 = vmax.f32 %v106_v58, 0.0  ;;  %v110_v63 = vpop.f32.mrb[3].mxu0 }
  0xf0   :  { %v113_v0 = vmax.f32 %v108_v60, 0.0 }
  0xf1   :  { %v114_v2 = vpack.c.bf16 %v112_v62, %v112_v62 }
  0xf2   :  { %v115_v1 = vpack.c.bf16 %v113_v0, %v113_v0 }
  0xf4   :  { %352 = vmatprep.mubr.bf16.mxu1 %v115_v1 }
  0xf5   :  { %353 = vmatmul.mubr.bf16.vlgmr.msra.gmra.mrb[0].mxu1 %v114_v2 }
 0x1c8   :  { %v354_v10 = vpop.f32.mrb[0].mxu1 }
 0x1c9   :  { %v355_v11 = vadd.f32 %v354_v10, %v153_v8  ;;  %v356_v12 = vpop.f32.mrb[1].mxu1 }
 0x1ca   :  { %v357_v13 = vadd.f32 %v356_v12, %v157_v9  ;;  %v358_v14 = vpop.f32.mrb[2].mxu1 }
 0x1cb   :  { %v361_v15 = vmax.f32 %v355_v11, 0.0  ;;  %v359_v16 = vpop.f32.mrb[3].mxu1 }
 0x1cc   :  { %v362_v17 = vmax.f32 %v357_v13, 0.0 }
 0x1cd   :  { %v363_v19 = vpack.c.bf16 %v361_v15, %v361_v15 }
 0x1ce   :  { %v364_v18 = vpack.c.bf16 %v362_v17, %v362_v17 }
 0x1d0   :  { %532 = vmatprep.mubr.bf16.mxu0 %v364_v18 }
 0x1d1   :  { %533 = vmatmul.mubr.bf16.vlgmr.msra.gmra.mrb[4].mxu0 %v363_v19 }
 0x2a4   :  { %v617_v20 = vpop.f32.mrb[4].mxu0 }
 0x2a5   :  { %v618_v22 = vpop.f32.mrb[5].mxu0 }
 0x2a6   :  { %v619_v23 = vadd.f32 %v618_v22, %v617_v20  ;;  %v620_v24 = vpop.f32.mrb[6].mxu0 }
 0x2a7   :  { %v621_v25 = vpop.f32.mrb[7].mxu0 }
 0x2a8   :  { %v535_v26 = vadd.f32 %v619_v23, %v584_v21 }
 0x2aa   :  { %693 = vtanh.f32 %v535_v26 }
 0x2b4   :  { %v694_v27 = vpop.eup %693 }
 0x2b5   :  { %542 = vst.msk [vmem:[%s848_s7] sm:$0xff] %vm541_vm2, %v694_v27 }
 0x2b6   :  { %547 = vsyncpa [#allocation3], 1 }

</bundles_post_ra>
